<compile_context>
chip_gen: v7x
topology: tpu7x:2x2x1
jax: 0.10.0
libtpu: 0.0.40
codegen_flags: <defaults>
</compile_context>

<pallas_src>
import functools
import math

import jax
import jax.numpy as jnp
from jax import lax
from jax.experimental import pallas as pl
from jax.experimental.pallas import tpu as pltpu


def _mha_kernel(q_ref, k_ref, v_ref, bias_ref,
                wq_ref, bq_ref, wk_ref, bk_ref,
                wv_ref, bv_ref, wo_ref, bo_ref,
                o_ref, ctx_ref, *, num_heads):
    """One (batch, query-tile) grid step: full-width projections + all heads + out proj."""
    x_q = q_ref[0]                                   # (Sq, D)
    x_k = k_ref[0]                                   # (S,  D)
    x_v = v_ref[0]                                   # (S,  D)
    cdt = x_q.dtype                                  # native MXU compute dtype (no up-cast)

    d_model = x_q.shape[-1]
    d_k = d_model // num_heads

    # Lane-dense full-width projections: output width = D (not d_k), so MXU result lanes
    # are fully used and x_q/x_k/x_v pass through vregs exactly once per step.
    # 1/sqrt(d_k) is already folded into wq/bq on the wrapper side.
    q_p = (jnp.dot(x_q, wq_ref[...], preferred_element_type=jnp.float32)
           + bq_ref[...]).astype(cdt)                # (Sq, D)
    k_p = (jnp.dot(x_k, wk_ref[...], preferred_element_type=jnp.float32)
           + bk_ref[...]).astype(cdt)                # (S, D) stored in compute dtype
    v_p = (jnp.dot(x_v, wv_ref[...], preferred_element_type=jnp.float32)
           + bv_ref[...]).astype(cdt)                # (S, D)

    bias = bias_ref[...]                             # (Sq, S) additive mask bias (0 / -1e9)

    # Head blocking with Hb == H: all heads inside one grid step (D == H*d_k for this
    # module).  Static column slices avoid dynamic lane offsets; per-head ctx is written
    # into static columns of a lane-dense (Sq, D) scratch so the head-concat is free and
    # the output projection below runs at full contraction depth D.
    for h in range(num_heads):
        lo = h * d_k
        q_h = q_p[:, lo:lo + d_k]
        k_h = k_p[:, lo:lo + d_k]
        v_h = v_p[:, lo:lo + d_k]

        # scores = Q_h @ K_h^T without materializing a transpose (NT dot_general).
        s = lax.dot_general(q_h, k_h, (((1,), (1,)), ((), ())),
                            preferred_element_type=jnp.float32)      # (Sq, S) f32
        s = s + bias

        # Numerically-stable softmax with EXACT normalization (approx reciprocal on an
        # (Sq,1) denominator buys nothing and only costs accuracy).
        m = jnp.max(s, axis=-1, keepdims=True)
        e = jnp.exp(s - m)
        attn = e / jnp.sum(e, axis=-1, keepdims=True)                 # (Sq, S) f32
        # TODO(synk): training-mode dropout on attn omitted (module evaluated in eval mode).

        ctx = jnp.dot(attn.astype(cdt), v_h,
                      preferred_element_type=jnp.float32)             # (Sq, d_k) f32
        ctx_ref[:, lo:lo + d_k] = ctx.astype(cdt)

    # Single full-depth output projection (head-concat fused into the scratch layout).
    out = (jnp.dot(ctx_ref[...], wo_ref[...], preferred_element_type=jnp.float32)
           + bo_ref[...])
    o_ref[0] = out.astype(o_ref.dtype)


def _pick_q_tile(seq_len):
    """Query-tile size: full sequence when small, otherwise a 128-multiple divisor.
    A 'parallel' query-tile grid axis keeps both v7x TensorCores busy (even at B == 1)
    and caps per-step score footprint at (Sq, S)."""
    if seq_len <= 512:
        return seq_len
    for t in (512, 256, 128):
        if seq_len % t == 0:
            return t
    return seq_len


def _pick_vmem_limit():
    """Derive the scoped-VMEM limit from hardware instead of hard-coding 32 MiB:
    ~3/4 of physical -> 96 MiB on v5e/v6e (128 MiB parts), 48 MiB on v7x (64 MiB)."""
    try:
        cap = pltpu.get_tpu_info().vmem_capacity_bytes
    except Exception:
        cap = 128 * 1024 * 1024
    return min(int(cap * 3 // 4), 96 * 1024 * 1024)


def multi_head_attention(q, k, v, mask, params, *, num_heads):
    """q, k, v: (B, S, D).  mask: (S, S), 0 == masked (broadcast over batch & heads).
    params: torch-layout weights  W:(out,in), b:(1,out)."""
    B, S, D = q.shape
    assert D % num_heads == 0
    d_k = D // num_heads
    scale = 1.0 / math.sqrt(d_k)

    # One-time wrapper-side layout prep (hoisted out of the kernel):
    #   * transpose to (in, out) so the kernel does y = x @ W (no in-kernel transposes)
    #   * fold 1/sqrt(d_k) into w_q / b_q
    wq = jnp.transpose(params["w_q"]) * scale
    bq = params["b_q"].reshape(1, D) * scale
    wk = jnp.transpose(params["w_k"])
    bk = params["b_k"].reshape(1, D)
    wv = jnp.transpose(params["w_v"])
    bv = params["b_v"].reshape(1, D)
    wo = jnp.transpose(params["w_o"])
    bo = params["b_o"].reshape(1, D)

    # int mask -> additive f32 bias: removes per-step compare+select and the int32 mask DMA.
    bias = jnp.where(mask == 0, jnp.float32(-1e9), jnp.float32(0.0))

    Sq = _pick_q_tile(S)
    n_q = S // Sq

    q_map = lambda b, qi: (b, qi, 0)
    kv_map = lambda b, qi: (b, 0, 0)        # constant across query tiles -> no re-DMA per qi
    const2d = lambda b, qi: (0, 0)          # constant across the whole grid -> VMEM-resident
    bias_map = lambda b, qi: (qi, 0)

    grid_spec = pltpu.PrefetchScalarGridSpec(
        num_scalar_prefetch=0,
        grid=(B, n_q),                              # both axes independent -> both "parallel"
        in_specs=[
            pl.BlockSpec((1, Sq, D), q_map),        # q   (query tile)
            pl.BlockSpec((1, S, D), kv_map),        # k
            pl.BlockSpec((1, S, D), kv_map),        # v
            pl.BlockSpec((Sq, S), bias_map),        # additive mask bias
            pl.BlockSpec((D, D), const2d),          # w_q  (resident)
            pl.BlockSpec((1, D), const2d),          # b_q
            pl.BlockSpec((D, D), const2d),          # w_k
            pl.BlockSpec((1, D), const2d),          # b_k
            pl.BlockSpec((D, D), const2d),          # w_v
            pl.BlockSpec((1, D), const2d),          # b_v
            pl.BlockSpec((D, D), const2d),          # w_o
            pl.BlockSpec((1, D), const2d),          # b_o
        ],
        out_specs=pl.BlockSpec((1, Sq, D), q_map),
        scratch_shapes=[pltpu.VMEM((Sq, D), q.dtype)],   # per-head ctx columns (head concat)
    )

    kernel = functools.partial(_mha_kernel, num_heads=num_heads)

    return pl.pallas_call(
        kernel,
        out_shape=jax.ShapeDtypeStruct((B, S, D), q.dtype),
        grid_spec=grid_spec,
        compiler_params=pltpu.CompilerParams(
            dimension_semantics=("parallel", "parallel"),
            vmem_limit_bytes=_pick_vmem_limit()),
    )(q, k, v, bias, wq, bq, wk, bk, wv, bv, wo, bo)


def _reference_mha(q, k, v, mask, params, num_heads):
    """Plain-JAX reference mirroring the PyTorch forward (eval mode)."""
    B, S, D = q.shape
    d_k = D // num_heads

    def lin(x, w, b):
        return jnp.einsum("bsd,od->bso", x, w) + b.reshape(1, 1, D)

    Q = lin(q, params["w_q"], params["b_q"]).reshape(B, S, num_heads, d_k).transpose(0, 2, 1, 3)
    K = lin(k, params["w_k"], params["b_k"]).reshape(B, S, num_heads, d_k).transpose(0, 2, 1, 3)
    V = lin(v, params["w_v"], params["b_v"]).reshape(B, S, num_heads, d_k).transpose(0, 2, 1, 3)

    scores = jnp.einsum("bhqd,bhkd->bhqk", Q, K) / math.sqrt(d_k)
    scores = jnp.where(mask[None, None] == 0, -1e9, scores)
    attn = jax.nn.softmax(scores, axis=-1)
    x = jnp.einsum("bhqk,bhkd->bhqd", attn, V)
    x = x.transpose(0, 2, 1, 3).reshape(B, S, D)
    return lin(x, params["w_o"], params["b_o"])


if __name__ == "__main__":
    B, S, D, H = 2, 8, 32, 4       # batch, seq_len, d_model, heads
    key = jax.random.PRNGKey(0)
    keys = jax.random.split(key, 12)

    scale = 1.0 / math.sqrt(D)
    params = {
        "w_q": jax.random.uniform(keys[0], (D, D), jnp.float32, -scale, scale),
        "b_q": jax.random.uniform(keys[1], (1, D), jnp.float32, -scale, scale),
        "w_k": jax.random.uniform(keys[2], (D, D), jnp.float32, -scale, scale),
        "b_k": jax.random.uniform(keys[3], (1, D), jnp.float32, -scale, scale),
        "w_v": jax.random.uniform(keys[4], (D, D), jnp.float32, -scale, scale),
        "b_v": jax.random.uniform(keys[5], (1, D), jnp.float32, -scale, scale),
        "w_o": jax.random.uniform(keys[6], (D, D), jnp.float32, -scale, scale),
        "b_o": jax.random.uniform(keys[7], (1, D), jnp.float32, -scale, scale),
    }

    q = jax.random.normal(keys[8], (B, S, D), jnp.float32)
    k = jax.random.normal(keys[9], (B, S, D), jnp.float32)
    v = jax.random.normal(keys[10], (B, S, D), jnp.float32)

    # Causal mask (0 == masked), broadcast over batch & heads.
    mask = jnp.tril(jnp.ones((S, S), jnp.int32))

    out = multi_head_attention(q, k, v, mask, params, num_heads=H)
    out = jax.block_until_ready(out)

    ref = _reference_mha(q, k, v, mask, params, H)
    assert out.shape == (B, S, D)
    # Exact softmax normalization now -> tight tolerance (only diff: scale folded into w_q
    # and different-but-valid matmul association, both ~1 ulp effects in f32).
    assert jnp.allclose(out, ref, atol=1e-4, rtol=1e-4), "mismatch vs reference"

    print("KERNEL_OK")
</pallas_src>

<mosaic_0001>
module attributes {stable_mosaic.version = 11 : i64} {
  func.func @_mha_kernel(%arg0: i32, %arg1: i32, %arg2: memref<1x8x32xf32, #tpu.memory_space<vmem>>, %arg3: memref<1x8x32xf32, #tpu.memory_space<vmem>>, %arg4: memref<1x8x32xf32, #tpu.memory_space<vmem>>, %arg5: memref<8x8xf32, #tpu.memory_space<vmem>>, %arg6: memref<32x32xf32, #tpu.memory_space<vmem>>, %arg7: memref<1x32xf32, #tpu.memory_space<vmem>>, %arg8: memref<32x32xf32, #tpu.memory_space<vmem>>, %arg9: memref<1x32xf32, #tpu.memory_space<vmem>>, %arg10: memref<32x32xf32, #tpu.memory_space<vmem>>, %arg11: memref<1x32xf32, #tpu.memory_space<vmem>>, %arg12: memref<32x32xf32, #tpu.memory_space<vmem>>, %arg13: memref<1x32xf32, #tpu.memory_space<vmem>>, %arg14: memref<1x8x32xf32, #tpu.memory_space<vmem>>, %arg15: memref<8x32xf32, #tpu.memory_space<vmem>>) attributes {dimension_semantics = [#tpu.dimension_semantics<parallel>, #tpu.dimension_semantics<parallel>], iteration_bounds = array<i64: 2, 1>, scalar_prefetch = 0 : i64, scratch_operands = 1 : i64, tpu.core_type = #tpu.core_type<tc>, window_params = [{transform_indices = @transform_0, window_bounds = array<i64: 1, 8, 32>}, {transform_indices = @transform_1, window_bounds = array<i64: 1, 8, 32>}, {transform_indices = @transform_2, window_bounds = array<i64: 1, 8, 32>}, {transform_indices = @transform_3, window_bounds = array<i64: 8, 8>}, {pipeline_mode = #tpu.pipeline_mode<synchronous>, transform_indices = @transform_4, window_bounds = array<i64: 32, 32>}, {pipeline_mode = #tpu.pipeline_mode<synchronous>, transform_indices = @transform_5, window_bounds = array<i64: 1, 32>}, {pipeline_mode = #tpu.pipeline_mode<synchronous>, transform_indices = @transform_6, window_bounds = array<i64: 32, 32>}, {pipeline_mode = #tpu.pipeline_mode<synchronous>, transform_indices = @transform_7, window_bounds = array<i64: 1, 32>}, {pipeline_mode = #tpu.pipeline_mode<synchronous>, transform_indices = @transform_8, window_bounds = array<i64: 32, 32>}, {pipeline_mode = #tpu.pipeline_mode<synchronous>, transform_indices = @transform_9, window_bounds = array<i64: 1, 32>}, {pipeline_mode = #tpu.pipeline_mode<synchronous>, transform_indices = @transform_10, window_bounds = array<i64: 32, 32>}, {pipeline_mode = #tpu.pipeline_mode<synchronous>, transform_indices = @transform_11, window_bounds = array<i64: 1, 32>}, {transform_indices = @transform_12, window_bounds = array<i64: 1, 8, 32>}]} {
    %c0 = arith.constant 0 : index
    %c0_0 = arith.constant 0 : index
    %c0_1 = arith.constant 0 : index
    %0 = vector.load %arg2[%c0, %c0_0, %c0_1] : memref<1x8x32xf32, #tpu.memory_space<vmem>>, vector<1x8x32xf32>
    %1 = vector.shape_cast %0 : vector<1x8x32xf32> to vector<8x32xf32>
    %c0_2 = arith.constant 0 : index
    %c0_3 = arith.constant 0 : index
    %c0_4 = arith.constant 0 : index
    %2 = vector.load %arg3[%c0_2, %c0_3, %c0_4] : memref<1x8x32xf32, #tpu.memory_space<vmem>>, vector<1x8x32xf32>
    %3 = vector.shape_cast %2 : vector<1x8x32xf32> to vector<8x32xf32>
    %c0_5 = arith.constant 0 : index
    %c0_6 = arith.constant 0 : index
    %c0_7 = arith.constant 0 : index
    %4 = vector.load %arg4[%c0_5, %c0_6, %c0_7] : memref<1x8x32xf32, #tpu.memory_space<vmem>>, vector<1x8x32xf32>
    %5 = vector.shape_cast %4 : vector<1x8x32xf32> to vector<8x32xf32>
    %c0_8 = arith.constant 0 : index
    %c0_9 = arith.constant 0 : index
    %6 = vector.load %arg6[%c0_8, %c0_9] : memref<32x32xf32, #tpu.memory_space<vmem>>, vector<32x32xf32>
    %cst = arith.constant dense<0.000000e+00> : vector<8x32xf32>
    %7 = tpu.matmul %1, %6, %cst {dimension_numbers = #tpu.dot_dimension_numbers<[1], [0], [0], [1], [0, 0, 1, 1], [], []>} : vector<8x32xf32>, vector<32x32xf32>, vector<8x32xf32> -> vector<8x32xf32>
    %c0_10 = arith.constant 0 : index
    %c0_11 = arith.constant 0 : index
    %8 = vector.load %arg7[%c0_10, %c0_11] : memref<1x32xf32, #tpu.memory_space<vmem>>, vector<1x32xf32>
    %9 = vector.broadcast %8 : vector<1x32xf32> to vector<8x32xf32>
    %10 = arith.addf %7, %9 : vector<8x32xf32>
    %c0_12 = arith.constant 0 : index
    %c0_13 = arith.constant 0 : index
    %11 = vector.load %arg8[%c0_12, %c0_13] : memref<32x32xf32, #tpu.memory_space<vmem>>, vector<32x32xf32>
    %cst_14 = arith.constant dense<0.000000e+00> : vector<8x32xf32>
    %12 = tpu.matmul %3, %11, %cst_14 {dimension_numbers = #tpu.dot_dimension_numbers<[1], [0], [0], [1], [0, 0, 1, 1], [], []>} : vector<8x32xf32>, vector<32x32xf32>, vector<8x32xf32> -> vector<8x32xf32>
    %c0_15 = arith.constant 0 : index
    %c0_16 = arith.constant 0 : index
    %13 = vector.load %arg9[%c0_15, %c0_16] : memref<1x32xf32, #tpu.memory_space<vmem>>, vector<1x32xf32>
    %14 = vector.broadcast %13 : vector<1x32xf32> to vector<8x32xf32>
    %15 = arith.addf %12, %14 : vector<8x32xf32>
    %c0_17 = arith.constant 0 : index
    %c0_18 = arith.constant 0 : index
    %16 = vector.load %arg10[%c0_17, %c0_18] : memref<32x32xf32, #tpu.memory_space<vmem>>, vector<32x32xf32>
    %cst_19 = arith.constant dense<0.000000e+00> : vector<8x32xf32>
    %17 = tpu.matmul %5, %16, %cst_19 {dimension_numbers = #tpu.dot_dimension_numbers<[1], [0], [0], [1], [0, 0, 1, 1], [], []>} : vector<8x32xf32>, vector<32x32xf32>, vector<8x32xf32> -> vector<8x32xf32>
    %c0_20 = arith.constant 0 : index
    %c0_21 = arith.constant 0 : index
    %18 = vector.load %arg11[%c0_20, %c0_21] : memref<1x32xf32, #tpu.memory_space<vmem>>, vector<1x32xf32>
    %19 = vector.broadcast %18 : vector<1x32xf32> to vector<8x32xf32>
    %20 = arith.addf %17, %19 : vector<8x32xf32>
    %c0_22 = arith.constant 0 : index
    %c0_23 = arith.constant 0 : index
    %21 = vector.load %arg5[%c0_22, %c0_23] : memref<8x8xf32, #tpu.memory_space<vmem>>, vector<8x8xf32>
    %22 = vector.extract_strided_slice %10 {offsets = [0, 0], sizes = [8, 8], strides = [1, 1]} : vector<8x32xf32> to vector<8x8xf32>
    %23 = vector.extract_strided_slice %15 {offsets = [0, 0], sizes = [8, 8], strides = [1, 1]} : vector<8x32xf32> to vector<8x8xf32>
    %24 = vector.extract_strided_slice %20 {offsets = [0, 0], sizes = [8, 8], strides = [1, 1]} : vector<8x32xf32> to vector<8x8xf32>
    %cst_24 = arith.constant dense<0.000000e+00> : vector<8x8xf32>
    %25 = tpu.matmul %22, %23, %cst_24 {dimension_numbers = #tpu.dot_dimension_numbers<[1], [1], [0], [0], [0, 0, 1, 0], [], []>} : vector<8x8xf32>, vector<8x8xf32>, vector<8x8xf32> -> vector<8x8xf32>
    %26 = arith.addf %25, %21 : vector<8x8xf32>
    %cst_25 = arith.constant dense<0xFF800000> : vector<8xf32>
    %27 = vector.multi_reduction <maximumf>, %26, %cst_25 [1] : vector<8x8xf32> to vector<8xf32>
    %28 = vector.shape_cast %27 : vector<8xf32> to vector<8x1xf32>
    %29 = vector.broadcast %28 : vector<8x1xf32> to vector<8x8xf32>
    %30 = arith.subf %26, %29 : vector<8x8xf32>
    %31 = math.exp %30 : vector<8x8xf32>
    %cst_26 = arith.constant dense<0.000000e+00> : vector<8xf32>
    %32 = vector.multi_reduction <add>, %31, %cst_26 [1] : vector<8x8xf32> to vector<8xf32>
    %33 = vector.shape_cast %32 : vector<8xf32> to vector<8x1xf32>
    %34 = vector.broadcast %33 : vector<8x1xf32> to vector<8x8xf32>
    %35 = arith.divf %31, %34 : vector<8x8xf32>
    %cst_27 = arith.constant dense<0.000000e+00> : vector<8x8xf32>
    %36 = tpu.matmul %35, %24, %cst_27 {dimension_numbers = #tpu.dot_dimension_numbers<[1], [0], [0], [1], [0, 0, 1, 1], [], []>} : vector<8x8xf32>, vector<8x8xf32>, vector<8x8xf32> -> vector<8x8xf32>
    %c0_28 = arith.constant 0 : index
    %c0_29 = arith.constant 0 : index
    %37 = vector.load %arg15[%c0_28, %c0_29] : memref<8x32xf32, #tpu.memory_space<vmem>>, vector<8x8xf32>
    tpu.vector_store %arg15[%c0_28, %c0_29], %36 {strides = array<i32>} : memref<8x32xf32, #tpu.memory_space<vmem>>, vector<8x8xf32>,
    %38 = vector.extract_strided_slice %10 {offsets = [0, 8], sizes = [8, 8], strides = [1, 1]} : vector<8x32xf32> to vector<8x8xf32>
    %39 = vector.extract_strided_slice %15 {offsets = [0, 8], sizes = [8, 8], strides = [1, 1]} : vector<8x32xf32> to vector<8x8xf32>
    %40 = vector.extract_strided_slice %20 {offsets = [0, 8], sizes = [8, 8], strides = [1, 1]} : vector<8x32xf32> to vector<8x8xf32>
    %cst_30 = arith.constant dense<0.000000e+00> : vector<8x8xf32>
    %41 = tpu.matmul %38, %39, %cst_30 {dimension_numbers = #tpu.dot_dimension_numbers<[1], [1], [0], [0], [0, 0, 1, 0], [], []>} : vector<8x8xf32>, vector<8x8xf32>, vector<8x8xf32> -> vector<8x8xf32>
    %42 = arith.addf %41, %21 : vector<8x8xf32>
    %cst_31 = arith.constant dense<0xFF800000> : vector<8xf32>
    %43 = vector.multi_reduction <maximumf>, %42, %cst_31 [1] : vector<8x8xf32> to vector<8xf32>
    %44 = vector.shape_cast %43 : vector<8xf32> to vector<8x1xf32>
    %45 = vector.broadcast %44 : vector<8x1xf32> to vector<8x8xf32>
    %46 = arith.subf %42, %45 : vector<8x8xf32>
    %47 = math.exp %46 : vector<8x8xf32>
    %cst_32 = arith.constant dense<0.000000e+00> : vector<8xf32>
    %48 = vector.multi_reduction <add>, %47, %cst_32 [1] : vector<8x8xf32> to vector<8xf32>
    %49 = vector.shape_cast %48 : vector<8xf32> to vector<8x1xf32>
    %50 = vector.broadcast %49 : vector<8x1xf32> to vector<8x8xf32>
    %51 = arith.divf %47, %50 : vector<8x8xf32>
    %cst_33 = arith.constant dense<0.000000e+00> : vector<8x8xf32>
    %52 = tpu.matmul %51, %40, %cst_33 {dimension_numbers = #tpu.dot_dimension_numbers<[1], [0], [0], [1], [0, 0, 1, 1], [], []>} : vector<8x8xf32>, vector<8x8xf32>, vector<8x8xf32> -> vector<8x8xf32>
    %c0_34 = arith.constant 0 : index
    %c8 = arith.constant 8 : index
    %53 = vector.load %arg15[%c0_34, %c8] : memref<8x32xf32, #tpu.memory_space<vmem>>, vector<8x8xf32>
    tpu.vector_store %arg15[%c0_34, %c8], %52 {strides = array<i32>} : memref<8x32xf32, #tpu.memory_space<vmem>>, vector<8x8xf32>,
    %54 = vector.extract_strided_slice %10 {offsets = [0, 16], sizes = [8, 8], strides = [1, 1]} : vector<8x32xf32> to vector<8x8xf32>
    %55 = vector.extract_strided_slice %15 {offsets = [0, 16], sizes = [8, 8], strides = [1, 1]} : vector<8x32xf32> to vector<8x8xf32>
    %56 = vector.extract_strided_slice %20 {offsets = [0, 16], sizes = [8, 8], strides = [1, 1]} : vector<8x32xf32> to vector<8x8xf32>
    %cst_35 = arith.constant dense<0.000000e+00> : vector<8x8xf32>
    %57 = tpu.matmul %54, %55, %cst_35 {dimension_numbers = #tpu.dot_dimension_numbers<[1], [1], [0], [0], [0, 0, 1, 0], [], []>} : vector<8x8xf32>, vector<8x8xf32>, vector<8x8xf32> -> vector<8x8xf32>
    %58 = arith.addf %57, %21 : vector<8x8xf32>
    %cst_36 = arith.constant dense<0xFF800000> : vector<8xf32>
    %59 = vector.multi_reduction <maximumf>, %58, %cst_36 [1] : vector<8x8xf32> to vector<8xf32>
    %60 = vector.shape_cast %59 : vector<8xf32> to vector<8x1xf32>
    %61 = vector.broadcast %60 : vector<8x1xf32> to vector<8x8xf32>
    %62 = arith.subf %58, %61 : vector<8x8xf32>
    %63 = math.exp %62 : vector<8x8xf32>
    %cst_37 = arith.constant dense<0.000000e+00> : vector<8xf32>
    %64 = vector.multi_reduction <add>, %63, %cst_37 [1] : vector<8x8xf32> to vector<8xf32>
    %65 = vector.shape_cast %64 : vector<8xf32> to vector<8x1xf32>
    %66 = vector.broadcast %65 : vector<8x1xf32> to vector<8x8xf32>
    %67 = arith.divf %63, %66 : vector<8x8xf32>
    %cst_38 = arith.constant dense<0.000000e+00> : vector<8x8xf32>
    %68 = tpu.matmul %67, %56, %cst_38 {dimension_numbers = #tpu.dot_dimension_numbers<[1], [0], [0], [1], [0, 0, 1, 1], [], []>} : vector<8x8xf32>, vector<8x8xf32>, vector<8x8xf32> -> vector<8x8xf32>
    %c0_39 = arith.constant 0 : index
    %c16 = arith.constant 16 : index
    %69 = vector.load %arg15[%c0_39, %c16] : memref<8x32xf32, #tpu.memory_space<vmem>>, vector<8x8xf32>
    tpu.vector_store %arg15[%c0_39, %c16], %68 {strides = array<i32>} : memref<8x32xf32, #tpu.memory_space<vmem>>, vector<8x8xf32>,
    %70 = vector.extract_strided_slice %10 {offsets = [0, 24], sizes = [8, 8], strides = [1, 1]} : vector<8x32xf32> to vector<8x8xf32>
    %71 = vector.extract_strided_slice %15 {offsets = [0, 24], sizes = [8, 8], strides = [1, 1]} : vector<8x32xf32> to vector<8x8xf32>
    %72 = vector.extract_strided_slice %20 {offsets = [0, 24], sizes = [8, 8], strides = [1, 1]} : vector<8x32xf32> to vector<8x8xf32>
    %cst_40 = arith.constant dense<0.000000e+00> : vector<8x8xf32>
    %73 = tpu.matmul %70, %71, %cst_40 {dimension_numbers = #tpu.dot_dimension_numbers<[1], [1], [0], [0], [0, 0, 1, 0], [], []>} : vector<8x8xf32>, vector<8x8xf32>, vector<8x8xf32> -> vector<8x8xf32>
    %74 = arith.addf %73, %21 : vector<8x8xf32>
    %cst_41 = arith.constant dense<0xFF800000> : vector<8xf32>
    %75 = vector.multi_reduction <maximumf>, %74, %cst_41 [1] : vector<8x8xf32> to vector<8xf32>
    %76 = vector.shape_cast %75 : vector<8xf32> to vector<8x1xf32>
    %77 = vector.broadcast %76 : vector<8x1xf32> to vector<8x8xf32>
    %78 = arith.subf %74, %77 : vector<8x8xf32>
    %79 = math.exp %78 : vector<8x8xf32>
    %cst_42 = arith.constant dense<0.000000e+00> : vector<8xf32>
    %80 = vector.multi_reduction <add>, %79, %cst_42 [1] : vector<8x8xf32> to vector<8xf32>
    %81 = vector.shape_cast %80 : vector<8xf32> to vector<8x1xf32>
    %82 = vector.broadcast %81 : vector<8x1xf32> to vector<8x8xf32>
    %83 = arith.divf %79, %82 : vector<8x8xf32>
    %cst_43 = arith.constant dense<0.000000e+00> : vector<8x8xf32>
    %84 = tpu.matmul %83, %72, %cst_43 {dimension_numbers = #tpu.dot_dimension_numbers<[1], [0], [0], [1], [0, 0, 1, 1], [], []>} : vector<8x8xf32>, vector<8x8xf32>, vector<8x8xf32> -> vector<8x8xf32>
    %c0_44 = arith.constant 0 : index
    %c24 = arith.constant 24 : index
    %85 = vector.load %arg15[%c0_44, %c24] : memref<8x32xf32, #tpu.memory_space<vmem>>, vector<8x8xf32>
    tpu.vector_store %arg15[%c0_44, %c24], %84 {strides = array<i32>} : memref<8x32xf32, #tpu.memory_space<vmem>>, vector<8x8xf32>,
    %c0_45 = arith.constant 0 : index
    %c0_46 = arith.constant 0 : index
    %86 = vector.load %arg15[%c0_45, %c0_46] : memref<8x32xf32, #tpu.memory_space<vmem>>, vector<8x32xf32>
    %c0_47 = arith.constant 0 : index
    %c0_48 = arith.constant 0 : index
    %87 = vector.load %arg12[%c0_47, %c0_48] : memref<32x32xf32, #tpu.memory_space<vmem>>, vector<32x32xf32>
    %cst_49 = arith.constant dense<0.000000e+00> : vector<8x32xf32>
    %88 = tpu.matmul %86, %87, %cst_49 {dimension_numbers = #tpu.dot_dimension_numbers<[1], [0], [0], [1], [0, 0, 1, 1], [], []>} : vector<8x32xf32>, vector<32x32xf32>, vector<8x32xf32> -> vector<8x32xf32>
    %c0_50 = arith.constant 0 : index
    %c0_51 = arith.constant 0 : index
    %89 = vector.load %arg13[%c0_50, %c0_51] : memref<1x32xf32, #tpu.memory_space<vmem>>, vector<1x32xf32>
    %90 = vector.broadcast %89 : vector<1x32xf32> to vector<8x32xf32>
    %91 = arith.addf %88, %90 : vector<8x32xf32>
    %c0_52 = arith.constant 0 : index
    %c0_53 = arith.constant 0 : index
    %c0_54 = arith.constant 0 : index
    %92 = vector.load %arg14[%c0_52, %c0_53, %c0_54] : memref<1x8x32xf32, #tpu.memory_space<vmem>>, vector<1x8x32xf32>
    %93 = vector.shape_cast %92 : vector<1x8x32xf32> to vector<8x32xf32>
    %94 = vector.shape_cast %91 : vector<8x32xf32> to vector<1x8x32xf32>
    tpu.vector_store %arg14[%c0_52, %c0_53, %c0_54], %94 {strides = array<i32>} : memref<1x8x32xf32, #tpu.memory_space<vmem>>, vector<1x8x32xf32>,
    return
  }
  func.func @transform_0(%arg0: i32, %arg1: i32) -> (i32, i32, i32) {
    %c0_i32 = arith.constant 0 : i32
    %c0_i32_0 = arith.constant 0 : i32
    return %arg0, %arg1, %c0_i32 : i32, i32, i32
  }
  func.func @transform_1(%arg0: i32, %arg1: i32) -> (i32, i32, i32) {
    %c0_i32 = arith.constant 0 : i32
    %c0_i32_0 = arith.constant 0 : i32
    %c0_i32_1 = arith.constant 0 : i32
    return %arg0, %c0_i32, %c0_i32_0 : i32, i32, i32
  }
  func.func @transform_2(%arg0: i32, %arg1: i32) -> (i32, i32, i32) {
    %c0_i32 = arith.constant 0 : i32
    %c0_i32_0 = arith.constant 0 : i32
    %c0_i32_1 = arith.constant 0 : i32
    return %arg0, %c0_i32, %c0_i32_0 : i32, i32, i32
  }
  func.func @transform_3(%arg0: i32, %arg1: i32) -> (i32, i32) {
    %c0_i32 = arith.constant 0 : i32
    %c0_i32_0 = arith.constant 0 : i32
    return %arg1, %c0_i32 : i32, i32
  }
  func.func @transform_4(%arg0: i32, %arg1: i32) -> (i32, i32) {
    %c0_i32 = arith.constant 0 : i32
    %c0_i32_0 = arith.constant 0 : i32
    %c0_i32_1 = arith.constant 0 : i32
    return %c0_i32, %c0_i32_0 : i32, i32
  }
  func.func @transform_5(%arg0: i32, %arg1: i32) -> (i32, i32) {
    %c0_i32 = arith.constant 0 : i32
    %c0_i32_0 = arith.constant 0 : i32
    %c0_i32_1 = arith.constant 0 : i32
    return %c0_i32, %c0_i32_0 : i32, i32
  }
  func.func @transform_6(%arg0: i32, %arg1: i32) -> (i32, i32) {
    %c0_i32 = arith.constant 0 : i32
    %c0_i32_0 = arith.constant 0 : i32
    %c0_i32_1 = arith.constant 0 : i32
    return %c0_i32, %c0_i32_0 : i32, i32
  }
  func.func @transform_7(%arg0: i32, %arg1: i32) -> (i32, i32) {
    %c0_i32 = arith.constant 0 : i32
    %c0_i32_0 = arith.constant 0 : i32
    %c0_i32_1 = arith.constant 0 : i32
    return %c0_i32, %c0_i32_0 : i32, i32
  }
  func.func @transform_8(%arg0: i32, %arg1: i32) -> (i32, i32) {
    %c0_i32 = arith.constant 0 : i32
    %c0_i32_0 = arith.constant 0 : i32
    %c0_i32_1 = arith.constant 0 : i32
    return %c0_i32, %c0_i32_0 : i32, i32
  }
  func.func @transform_9(%arg0: i32, %arg1: i32) -> (i32, i32) {
    %c0_i32 = arith.constant 0 : i32
    %c0_i32_0 = arith.constant 0 : i32
    %c0_i32_1 = arith.constant 0 : i32
    return %c0_i32, %c0_i32_0 : i32, i32
  }
  func.func @transform_10(%arg0: i32, %arg1: i32) -> (i32, i32) {
    %c0_i32 = arith.constant 0 : i32
    %c0_i32_0 = arith.constant 0 : i32
    %c0_i32_1 = arith.constant 0 : i32
    return %c0_i32, %c0_i32_0 : i32, i32
  }
  func.func @transform_11(%arg0: i32, %arg1: i32) -> (i32, i32) {
    %c0_i32 = arith.constant 0 : i32
    %c0_i32_0 = arith.constant 0 : i32
    %c0_i32_1 = arith.constant 0 : i32
    return %c0_i32, %c0_i32_0 : i32, i32
  }
  func.func @transform_12(%arg0: i32, %arg1: i32) -> (i32, i32, i32) {
    %c0_i32 = arith.constant 0 : i32
    %c0_i32_0 = arith.constant 0 : i32
    return %arg0, %arg1, %c0_i32 : i32, i32, i32
  }
}

</mosaic_0001>

<bundles_post_ra>
// kernel: tpu_custom_call.1
= control target key start
LH: loop header
LB: loop body
LE: loop exit
PB: predicated region body
PF: predicated region fallthrough
CT: control target
= control target key end

     0   :  { %s3402_s0 = inlined_call_operand.hbm [shape: f32[2,8,32], index: 0, kind: input, shape index: {}]   ;;  %s3403_s1 = inlined_call_operand.hbm [shape: f32[2,8,32], index: 1, kind: input, shape index: {}]   ;;  %s3404_s2 = inlined_call_operand.hbm [shape: f32[2,8,32], index: 2, kind: input, shape index: {}]   ;;  %s3405_s3 = inlined_call_operand.hbm [shape: f32[8,8], index: 3, kind: input, shape index: {}]   ;;  %s3406_s4 = inlined_call_operand.hbm [shape: f32[32,32], index: 4, kind: input, shape index: {}]   ;;  %s3407_s5 = inlined_call_operand.hbm [shape: f32[1,32], index: 5, kind: input, shape index: {}]   ;;  %s3408_s6 = inlined_call_operand.hbm [shape: f32[32,32], index: 6, kind: input, shape index: {}]   ;;  %s3409_s7 = inlined_call_operand.hbm [shape: f32[1,32], index: 7, kind: input, shape index: {}]   ;;  %s3410_s8 = inlined_call_operand.hbm [shape: f32[32,32], index: 8, kind: input, shape index: {}]   ;;  %s3411_s9 = inlined_call_operand.hbm [shape: f32[1,32], index: 9, kind: input, shape index: {}]   ;;  %s3412_s10 = inlined_call_operand.hbm [shape: f32[32,32], index: 10, kind: input, shape index: {}]   ;;  %s3413_s11 = inlined_call_operand.hbm [shape: f32[1,32], index: 11, kind: input, shape index: {}]   ;;  %s3414_s12 = inlined_call_operand.hbm [shape: f32[2,8,32], index: 12, kind: output, shape index: {}]  }
   0x1   :  { %3439 = sst [smem:[#allocation41_spill]] %s3403_s1 }
   0x2   :  { %3440 = sst [smem:[#allocation42_spill]] %s3404_s2 }
   0x3   :  { %3441 = sst [smem:[#allocation43_spill]] %s3405_s3 }
   0x4   :  { %3442 = sst [smem:[#allocation44_spill]] %s3407_s5 }
   0x5   :  { %3443 = sst [smem:[#allocation45_spill]] %s3409_s7 }
   0x6   :  { %3444 = sst [smem:[#allocation46_spill]] %s3411_s9 }
   0x7   :  { %3445 = sst [smem:[#allocation47_spill]] %s3414_s12 }
   0x8   :  { %17 = vsyncpa [#allocation4], 0 }
   0x9   :  { %19 = vsyncpa [#allocation4 + $0x1], 0 }
   0xa   :  { %20 = vsyncpa [#allocation7], 0 }
   0xb   :  { %22 = vsyncpa [#allocation7 + $0x1], 0 }
   0xc   :  { %23 = vsyncpa [#allocation10], 0 }
   0xd   :  { %24 = vsyncpa [#allocation13], 0 }
   0xe   :  { %25 = vsyncpa [#allocation16], 0 }
   0xf   :  { %26 = vsyncpa [#allocation19], 0 }
  0x10   :  { %27 = vsyncpa [#allocation22], 0 }
  0x11   :  { %28 = vsyncpa [#allocation5], 0 }
  0x12   :  { %30 = vsyncpa [#allocation5 + $0x1], 0  ;;  %s2820_s21 = smov 0   ;;  %s2822_s22 = smov 0  }
  0x13   :  { %s2824_s23 = smov 0   ;;  %s2826_s24 = smov 0  }
  0x14   :  { %s2828_s25 = smov 0   ;;  %s2830_s26 = smov 0  }
  0x15 LB: > { %3446 = sst [smem:[#allocation32_spill]] %s2709_s21  ;;  %s2851_s27 = sadd.s32 4294967295, %s2729_s26   ;;  %s2729_s26 = sphi %s2830_s26, %s36_s26   ;;  %s2725_s25 = sphi %s2828_s25, %s3502_s25   ;;  %s2721_s24 = sphi %s2826_s24, %s3501_s24   ;;  %s2717_s23 = sphi %s2824_s23, %s3505_s23   ;;  %s2713_s22 = sphi %s2822_s22, %s3504_s22   ;;  %s2709_s21 = sphi %s2820_s21, %s3503_s21  }
  0x16   : > { %3447 = sst [smem:[#allocation33_spill]] %s2721_s24  ;;  %p1892_p0 = scmp.ge.s32.totalorder %s2729_s26, 1 }
  0x17   : > { %3448 = sst [smem:[#allocation34_spill]] %s2725_s25  ;;  %p3416_p1 = scmp.eq.s32.totalorder %s2851_s27, 0 }
  0x18   : > { %3449 = sst [smem:[#allocation35_spill]] %s2729_s26  ;;  %p355_p2 = scmp.lt.s32.totalorder %s2729_s26, 3 }
  0x19   : > { %s2731_s29 = smov [#allocation9]   ;;  %s2732_s13 = smov [#allocation12]  }
  0x1a   : > { %p2856_p3 = pnand %p1892_p0, %p355_p2  ;;  %s370_s30 = sshll.u32 %s2731_s29, 4  ;;  %s371_s30 = int_to_ptr.vmem [resolvable:$true] %s370_s30 }
  0x1b   : > { %s394_s14 = sshll.u32 %s2732_s13, 4  ;;  %s2733_s16 = smov [#allocation15]   ;;  %s2869_s14 = int_to_ptr.vmem [resolvable:$true] %s394_s14 }
  0x1c   : > { %s3450_s28 = scalar_select %p2856_p3, 1, 0 }
  0x1d   : > { %p2135_p5 = pneg %p2856_p3  ;;  %s418_s17 = sshll.u32 %s2733_s16, 4  ;;  %s2871_s17 = int_to_ptr.vmem [resolvable:$true] %s418_s17 }
  0x1e   : > { %3451 = sst [smem:[#allocation36_spill]] %s3450_s28  ;;  %s3453_s3 = sld [smem:[#allocation43_spill]] }
  0x1f   : > { %p2865_p6 = pnand %p2135_p5, %p3416_p1 }
  0x21   : > { %s3452_s15 = scalar_select %p2865_p6, 1, 0 }
  0x22   : > { %p2881_p8 = pneg %p2865_p6 }
  0x24   : > { %s2281_s20 = scalar_lea.hbm %s3453_s3, 128 }
  0x25   : > { %p2282_p7 = scmp.ne.s32.totalorder %s3453_s3, %s2281_s20  ;;  %p2288_p11 = scmp.lt.u32.totalorder %s2281_s20, %s3453_s3 }
  0x26   : > { %s3454_s13 = scalar_select %p2881_p8, 1, 0 }
  0x27   : > { %p2284_p9 = pnand %p2881_p8, %p2282_p7 }
  0x29   : > { %p2285_p10 = pneg %p2284_p9 }
  0x2b   : > { %p2290_p12 = pnand %p2288_p11, %p2285_p10 }
  0x2d   : > { %2293 = shalt.err (!%p2290_p12)
}
  0x2e   : > { %s2294_s18 = scalar_lea.vmem %s371_s30, 128  ;;  %p2302_p5 = scmp.lt.s32.totalorder %s371_s30, %s371_s30 }
  0x2f   : > { %p2295_p13 = scmp.ne.s32.totalorder %s371_s30, %s2294_s18  ;;  %p2303_p4 = scmp.lt.s32.totalorder %s2294_s18, %s2294_s18 }
  0x31   : > { %p2297_p0 = pnand %p2295_p13, %p2881_p8  ;;  %p2304_p1 = por %p2303_p4, %p2302_p5 }
  0x33   : > { %p2298_p2 = pneg %p2297_p0 }
  0x35   : > { %p2305_p3 = pnand %p2304_p1, %p2298_p2 }
  0x37   : > { %2308 = shalt.err (!%p2305_p3)
}
  0x38   : > { %2138 = dma.hbm_to_vmem [thread:$0]  (!%p2865_p6), %s3453_s3, 128, %s371_s30, [#allocation10]  }
  0x39   : > { %s3455_s5 = sld [smem:[#allocation44_spill]] }
  0x3f   : > { %s2309_s29 = scalar_lea.hbm %s3455_s5, 16 }
  0x40   : > { %p2310_p7 = scmp.ne.s32.totalorder %s3455_s5, %s2309_s29  ;;  %p2316_p1 = scmp.lt.u32.totalorder %s2309_s29, %s3455_s5 }
  0x42   : > { %p2312_p9 = pnand %p2310_p7, %p2881_p8 }
  0x44   : > { %p2313_p4 = pneg %p2312_p9 }
  0x46   : > { %p2318_p3 = pnand %p2316_p1, %p2313_p4 }
  0x48   : > { %2321 = shalt.err (!%p2318_p3)
}
  0x49   : > { %s2322_s30 = scalar_lea.vmem %s2869_s14, 16  ;;  %s2329_s28 = scalar_lea.vmem %s2869_s14, 32 }
  0x4a   : > { %p2323_p10 = scmp.ne.s32.totalorder %s2869_s14, %s2322_s30  ;;  %p2330_p13 = scmp.lt.s32.totalorder %s2869_s14, %s2869_s14 }
  0x4b   : > { %p2331_p0 = scmp.lt.s32.totalorder %s2329_s28, %s2322_s30 }
  0x4c   : > { %p2325_p11 = pnand %p2323_p10, %p2881_p8 }
  0x4d   : > { %p2332_p2 = por %p2331_p0, %p2330_p13 }
  0x4e   : > { %p2326_p12 = pneg %p2325_p11 }
  0x50   : > { %p2333_p5 = pnand %p2332_p2, %p2326_p12 }
  0x52   : > { %2336 = shalt.err (!%p2333_p5)
}
  0x53   : > { %2144 = dma.hbm_to_vmem [thread:$0]  (!%p2865_p6), %s3455_s5, 16, %s2869_s14, [#allocation13]  }
  0x54   : > { %s3456_s7 = sld [smem:[#allocation45_spill]] }
  0x5a   : > { %s2337_s20 = scalar_lea.hbm %s3456_s7, 16 }
  0x5b   : > { %p2338_p7 = scmp.ne.s32.totalorder %s3456_s7, %s2337_s20  ;;  %p2344_p1 = scmp.lt.u32.totalorder %s2337_s20, %s3456_s7 }
  0x5d   : > { %p2340_p9 = pnand %p2338_p7, %p2881_p8 }
  0x5f   : > { %p2341_p4 = pneg %p2340_p9 }
  0x61   : > { %p2346_p3 = pnand %p2344_p1, %p2341_p4 }
  0x63   : > { %2349 = shalt.err (!%p2346_p3)
}
  0x64   : > { %s2350_s14 = scalar_lea.vmem %s2871_s17, 16  ;;  %s2357_s28 = scalar_lea.vmem %s2871_s17, 32 }
  0x65   : > { %p2351_p10 = scmp.ne.s32.totalorder %s2871_s17, %s2350_s14  ;;  %p2358_p13 = scmp.lt.s32.totalorder %s2871_s17, %s2871_s17 }
  0x66   : > { %p2359_p0 = scmp.lt.s32.totalorder %s2357_s28, %s2350_s14 }
  0x67   : > { %p2353_p11 = pnand %p2351_p10, %p2881_p8 }
  0x68   : > { %p2360_p2 = por %p2359_p0, %p2358_p13 }
  0x69   : > { %p2354_p12 = pneg %p2353_p11 }
  0x6b   : > { %p2361_p5 = pnand %p2360_p2, %p2354_p12 }
  0x6d   : > { %2364 = shalt.err (!%p2361_p5)
}
  0x6e   : > { %2150 = dma.hbm_to_vmem [thread:$0]  (!%p2865_p6), %s3456_s7, 16, %s2871_s17, [#allocation16]  }
  0x6f   : > { %s2734_s19 = smov [#allocation18]   ;;  %s3457_s9 = sld [smem:[#allocation46_spill]] }
  0x70   : > { %s442_s24 = sshll.u32 %s2734_s19, 4  ;;  %s443_s24 = int_to_ptr.vmem [resolvable:$true] %s442_s24 }
  0x75   : > { %s2365_s16 = scalar_lea.hbm %s3457_s9, 16 }
  0x76   : > { %p2366_p7 = scmp.ne.s32.totalorder %s3457_s9, %s2365_s16  ;;  %p2372_p1 = scmp.lt.u32.totalorder %s2365_s16, %s3457_s9 }
  0x78   : > { %p2368_p9 = pnand %p2366_p7, %p2881_p8 }
  0x7a   : > { %p2369_p4 = pneg %p2368_p9 }
  0x7c   : > { %p2374_p3 = pnand %p2372_p1, %p2369_p4 }
  0x7e   : > { %2377 = shalt.err (!%p2374_p3)
}
  0x7f   : > { %s2378_s17 = scalar_lea.vmem %s443_s24, 16  ;;  %s2385_s2 = scalar_lea.vmem %s443_s24, 32 }
  0x80   : > { %p2379_p10 = scmp.ne.s32.totalorder %s443_s24, %s2378_s17  ;;  %p2386_p13 = scmp.lt.s32.totalorder %s443_s24, %s443_s24 }
  0x81   : > { %p2387_p0 = scmp.lt.s32.totalorder %s2385_s2, %s2378_s17 }
  0x82   : > { %p2381_p11 = pnand %p2379_p10, %p2881_p8 }
  0x83   : > { %p2388_p2 = por %p2387_p0, %p2386_p13 }
  0x84   : > { %p2382_p12 = pneg %p2381_p11 }
  0x86   : > { %p2389_p5 = pnand %p2388_p2, %p2382_p12 }
  0x88   : > { %2392 = shalt.err (!%p2389_p5)
}
  0x89   : > { %2156 = dma.hbm_to_vmem [thread:$0]  (!%p2865_p6), %s3457_s9, 16, %s443_s24, [#allocation19]  }
  0x8a   : > { %s1891_s20 = sadd.s32 4294967294, %s2729_s26   ;;  %s48_s29 = sadd.s32 1, %s2725_s25 }
  0x8b   : > { %p50_p7 = scmp.ge.s32.totalorder %s48_s29, 2  ;;  %s57_s16 = sadd.s32 1, %s2717_s23 }
  0x8c   : > { %p64_p9 = scmp.ne.s32.totalorder %s2717_s23, %s2713_s22  ;;  %p65_p4 = scmp.eq.s32.totalorder %s2729_s26, 0 }
  0x8d   : > { %s3507_s29 = smov (%p50_p7, %s48_s29), 0  ;;  %p70_p3 = scmp.ne.s32.totalorder %s2713_s22, %s2709_s21 }
  0x8e   : > { %3458 = sst [smem:[#allocation37_spill]] %s3507_s29  ;;  %p2971_p1 = por %p65_p4, %p64_p9 }
  0x8f   : > { %s52_s24 = ssub.s32 %s2725_s25, %s3507_s29  ;;  %p342_p10 = scmp.eq.s32.totalorder %s2851_s27, 1 }
  0x90   : > { %p55_p11 = scmp.eq.s32.totalorder %s52_s24, 0  ;;  %p3460_p12 = scmp.eq.s32.totalorder %s2851_s27, 0 }
  0x91   : > { %p2986_p0 = por %p342_p10, %p64_p9  ;;  %p348_p2 = scmp.eq.s32.totalorder %s1891_s20, 1 }
  0x92   : > { %p2982_p13 = por %p3460_p12, %p70_p3  ;;  %p2186_p7 = scmp.lt.s32.totalorder %s2729_s26, 2 }
  0x93   : > { %s3462_s14 = scalar_select %p2986_p0, 1, 0 }
  0x94   : > { %s3461_s30 = scalar_select %p2982_p13, 1, 0 }
  0x95   : > { %3463 = sst [smem:[#allocation38_spill]] %s3462_s14  ;;  %p2993_p5 = por %p348_p2, %p70_p3 }
  0x96   : > { %s2991_s28 = scalar_select %p55_p11, %s2717_s23, %s57_s16  }
  0x97   : > { %s3465_s17 = scalar_select %p2993_p5, 1, 0 }
  0x98   : > { %3464 = sst [smem:[#allocation39_spill]] %s2991_s28  ;;  %s3420_s2 = sand.u32 1, %s2717_s23  }
  0x99   : > { %3466 = sst [smem:[#allocation40_spill]] %s3465_s17  ;;  %s3000_s12 = sshll.u32 %s2725_s25, 7 }
  0x9a   : > { %s3004_s19 = sshll.u32 %s3420_s2, 3  ;;  %p3008_p9 = pnand %p2186_p7, %p2971_p1 }
  0x9b   : > { %s496_s20 = sand.u32 1, %s2729_s26   ;;  %s3468_s1 = sld [smem:[#allocation41_spill]] }
  0x9c   : > { %s3467_s24 = scalar_select %p3008_p9, 1, 0 }
  0x9d   : > { %s500_s7 = scalar_lea.vmem [#allocation6], %s3004_s19  ;;  %s3022_s18 = scalar_lea.sflag [#allocation7], %s496_s20 }
  0x9e   : > { %s507_s2 = sshll.u32 %s500_s7, 4  ;;  %p3028_p1 = pneg %p3008_p9  ;;  %s3020_s2 = int_to_ptr.vmem [resolvable:$true] %s507_s2 }
  0xa0   : > { %s3469_s29 = scalar_select %p3028_p1, 1, 0 }
  0xa1   : > { %s3017_s5 = scalar_lea.hbm %s3468_s1, %s3000_s12  ;;  %s2398_s25 = scalar_lea.hbm %s3468_s1, 256 }
  0xa2   : > { %s2393_s9 = scalar_lea.hbm %s3017_s5, 128  ;;  %p2399_p11 = scmp.lt.u32.totalorder %s3017_s5, %s3468_s1 }
  0xa3   : > { %p2394_p4 = scmp.ne.s32.totalorder %s3017_s5, %s2393_s9  ;;  %p2400_p12 = scmp.lt.u32.totalorder %s2398_s25, %s2393_s9 }
  0xa4   : > { %p2402_p7 = scmp.lt.u32.totalorder %s2393_s9, %s3017_s5 }
  0xa5   : > { %p2396_p3 = pnand %p3028_p1, %p2394_p4  ;;  %p2401_p2 = por %p2400_p12, %p2399_p11 }
  0xa7   : > { %p2397_p10 = pneg %p2396_p3  ;;  %p2403_p5 = por %p2402_p7, %p2401_p2 }
  0xa9   : > { %p2404_p0 = pnand %p2403_p5, %p2397_p10 }
  0xab   : > { %2407 = shalt.err (!%p2404_p0)
}
  0xac   : > { %s2408_s20 = scalar_lea.vmem %s3020_s2, 128  ;;  %s2735_s3 = smov [#allocation6]  }
  0xad   : > { %p2409_p4 = scmp.ne.s32.totalorder %s3020_s2, %s2408_s20  ;;  %s2413_s16 = sshll.u32 %s2735_s3, 4  ;;  %s2414_s16 = int_to_ptr.vmem [resolvable:$false] %s2413_s16 }
  0xae   : > { %s2415_s28 = scalar_lea.vmem %s2414_s16, 256  ;;  %p2416_p6 = scmp.lt.s32.totalorder %s3020_s2, %s2414_s16 }
  0xaf   : > { %p2411_p3 = pnand %p2409_p4, %p3028_p1  ;;  %p2417_p8 = scmp.lt.s32.totalorder %s2415_s28, %s2408_s20 }
  0xb1   : > { %p2412_p13 = pneg %p2411_p3  ;;  %p2418_p11 = por %p2417_p8, %p2416_p6 }
  0xb3   : > { %p2419_p12 = pnand %p2418_p11, %p2412_p13 }
  0xb5   : > { %2422 = shalt.err (!%p2419_p12)
}
  0xb6   : > { %2169 = dma.hbm_to_vmem [thread:$0]  (!%p3008_p9), %s3017_s5, 128, %s3020_s2, %s3022_s18  }
  0xb7   : > { %s2736_s9 = smov [#allocation11]   ;;  %s2423_s3 = scalar_lea.hbm %s3406_s4, 512 }
  0xb8   : > { %s380_s25 = sshll.u32 %s2736_s9, 4  ;;  %p2424_p6 = scmp.ne.s32.totalorder %s3406_s4, %s2423_s3  ;;  %s381_s25 = int_to_ptr.vmem [resolvable:$true] %s380_s25 }
  0xb9   : > { %p3470_p8 = scmp.ne.s32.totalorder %s3454_s13, 0  ;;  %p2430_p5 = scmp.lt.u32.totalorder %s2423_s3, %s3406_s4 }
  0xbb   : > { %p2426_p13 = pnand %p2424_p6, %p3470_p8 }
  0xbd   : > { %p2427_p0 = pneg %p2426_p13 }
  0xbf   : > { %p2432_p10 = pnand %p2430_p5, %p2427_p0 }
  0xc1   : > { %2435 = shalt.err (!%p2432_p10)
}
  0xc2   : > { %s2436_s5 = scalar_lea.vmem %s381_s25, 512  ;;  %p2444_p3 = scmp.lt.s32.totalorder %s381_s25, %s381_s25 }
  0xc3   : > { %p2437_p2 = scmp.ne.s32.totalorder %s381_s25, %s2436_s5  ;;  %p2445_p11 = scmp.lt.s32.totalorder %s2436_s5, %s2436_s5 }
  0xc5   : > { %p2439_p7 = pnand %p2437_p2, %p3470_p8  ;;  %p2446_p12 = por %p2445_p11, %p2444_p3 }
  0xc7   : > { %p2440_p4 = pneg %p2439_p7 }
  0xc9   : > { %p2447_p9 = pnand %p2446_p12, %p2440_p4 }
  0xcb   : > { %2450 = shalt.err (!%p2447_p9)
}
  0xcc   : > { %s2737_s1 = smov 128   ;;  %s2738_s26 = smov 8  }
  0xcd   : > { %p3471_p6 = scmp.ne.s32.totalorder %s3452_s15, 0  ;;  %s2739_s7 = smov [#allocation14]  }
  0xce   : > { %s404_s3 = sshll.u32 %s2739_s7, 4  ;;  %s2740_s16 = smov [#allocation17]   ;;  %s405_s3 = int_to_ptr.vmem [resolvable:$true] %s404_s3 }
  0xcf   : > { %2141 = dma.hbm_to_vmem [thread:$0]  (!%p3471_p6), %s3406_s4, 512, %s381_s25, [#allocation10], %s2737_s1, %s2737_s1, %s2738_s26  }
  0xd0   : > { %s428_s20 = sshll.u32 %s2740_s16, 4  ;;  %s2451_s17 = scalar_lea.hbm %s3408_s6, 512  ;;  %s3073_s20 = int_to_ptr.vmem [resolvable:$true] %s428_s20 }
  0xd1   : > { %p2452_p9 = scmp.ne.s32.totalorder %s3408_s6, %s2451_s17  ;;  %p2458_p5 = scmp.lt.u32.totalorder %s2451_s17, %s3408_s6 }
  0xd3   : > { %p2454_p13 = pnand %p2452_p9, %p3470_p8 }
  0xd5   : > { %p2455_p0 = pneg %p2454_p13 }
  0xd7   : > { %p2460_p10 = pnand %p2458_p5, %p2455_p0 }
  0xd9   : > { %2463 = shalt.err (!%p2460_p10)
}
  0xda   : > { %s2464_s9 = scalar_lea.vmem %s405_s3, 512  ;;  %p2472_p3 = scmp.lt.s32.totalorder %s405_s3, %s405_s3 }
  0xdb   : > { %p2465_p2 = scmp.ne.s32.totalorder %s405_s3, %s2464_s9  ;;  %p2473_p11 = scmp.lt.s32.totalorder %s2464_s9, %s2464_s9 }
  0xdd   : > { %p2467_p7 = pnand %p2465_p2, %p3470_p8  ;;  %p2474_p12 = por %p2473_p11, %p2472_p3 }
  0xdf   : > { %p2468_p4 = pneg %p2467_p7 }
  0xe1   : > { %p2475_p1 = pnand %p2474_p12, %p2468_p4 }
  0xe3   : > { %2478 = shalt.err (!%p2475_p1)
}
  0xe4   : > { %2147 = dma.hbm_to_vmem [thread:$0]  (!%p3471_p6), %s3408_s6, 512, %s405_s3, [#allocation13], %s2737_s1, %s2737_s1, %s2738_s26  }
  0xe5   : > { %s2479_s16 = scalar_lea.hbm %s3410_s8, 512 }
  0xe6   : > { %p2480_p9 = scmp.ne.s32.totalorder %s3410_s8, %s2479_s16  ;;  %p2486_p0 = scmp.lt.u32.totalorder %s2479_s16, %s3410_s8 }
  0xe8   : > { %p2482_p1 = pnand %p2480_p9, %p3470_p8 }
  0xea   : > { %p2483_p13 = pneg %p2482_p1 }
  0xec   : > { %p2488_p5 = pnand %p2486_p0, %p2483_p13 }
  0xee   : > { %2491 = shalt.err (!%p2488_p5)
}
  0xef   : > { %s2492_s3 = scalar_lea.vmem %s3073_s20, 512  ;;  %p2500_p4 = scmp.lt.s32.totalorder %s3073_s20, %s3073_s20 }
  0xf0   : > { %p2493_p10 = scmp.ne.s32.totalorder %s3073_s20, %s2492_s3  ;;  %p2501_p3 = scmp.lt.s32.totalorder %s2492_s3, %s2492_s3 }
  0xf2   : > { %p2495_p2 = pnand %p2493_p10, %p3470_p8  ;;  %p2502_p11 = por %p2501_p3, %p2500_p4 }
  0xf4   : > { %p2496_p7 = pneg %p2495_p2 }
  0xf6   : > { %p2503_p12 = pnand %p2502_p11, %p2496_p7 }
  0xf8   : > { %2506 = shalt.err (!%p2503_p12)
}
  0xf9   : > { %2153 = dma.hbm_to_vmem [thread:$0]  (!%p3471_p6), %s3410_s8, 512, %s3073_s20, [#allocation16], %s2737_s1, %s2737_s1, %s2738_s26  }
  0xfa   : > { %s2741_s14 = smov [#allocation20]   ;;  %s2742_s7 = smov [#allocation21]  }
  0xfb   : > { %s452_s17 = sshll.u32 %s2741_s14, 4  ;;  %s466_s16 = sshll.u32 %s2742_s7, 4  ;;  %s453_s17 = int_to_ptr.vmem [resolvable:$true] %s452_s17  ;;  %s3122_s16 = int_to_ptr.vmem [resolvable:$true] %s466_s16 }
  0xfc   : > { %s2507_s2 = scalar_lea.hbm %s3412_s10, 512 }
  0xfd   : > { %p2508_p9 = scmp.ne.s32.totalorder %s3412_s10, %s2507_s2  ;;  %p2514_p0 = scmp.lt.u32.totalorder %s2507_s2, %s3412_s10 }
  0xff   : > { %p2510_p1 = pnand %p2508_p9, %p3470_p8 }
 0x101   : > { %p2511_p13 = pneg %p2510_p1 }
 0x103   : > { %p2516_p5 = pnand %p2514_p0, %p2511_p13 }
 0x105   : > { %2519 = shalt.err (!%p2516_p5)
}
 0x106   : > { %s2520_s21 = scalar_lea.vmem %s453_s17, 512  ;;  %p2528_p4 = scmp.lt.s32.totalorder %s453_s17, %s453_s17 }
 0x107   : > { %p2521_p10 = scmp.ne.s32.totalorder %s453_s17, %s2520_s21  ;;  %p2529_p3 = scmp.lt.s32.totalorder %s2520_s21, %s2520_s21 }
 0x109   : > { %p2523_p2 = pnand %p2521_p10, %p3470_p8  ;;  %p2530_p11 = por %p2529_p3, %p2528_p4 }
 0x10b   : > { %p2524_p7 = pneg %p2523_p2 }
 0x10d   : > { %p2531_p12 = pnand %p2530_p11, %p2524_p7 }
 0x10f   : > { %2534 = shalt.err (!%p2531_p12)
}
 0x110   : > { %2159 = dma.hbm_to_vmem [thread:$0]  (!%p3471_p6), %s3412_s10, 512, %s453_s17, [#allocation19], %s2737_s1, %s2737_s1, %s2738_s26  }
 0x111   : > { %s2535_s2 = scalar_lea.hbm %s3413_s11, 16 }
 0x112   : > { %p2536_p9 = scmp.ne.s32.totalorder %s3413_s11, %s2535_s2  ;;  %p2542_p0 = scmp.lt.u32.totalorder %s2535_s2, %s3413_s11 }
 0x114   : > { %p2538_p1 = pnand %p2536_p9, %p3470_p8 }
 0x116   : > { %p2539_p13 = pneg %p2538_p1 }
 0x118   : > { %p2544_p5 = pnand %p2542_p0, %p2539_p13 }
 0x11a   : > { %2547 = shalt.err (!%p2544_p5)
}
 0x11b   : > { %s2548_s1 = scalar_lea.vmem %s3122_s16, 16  ;;  %s2555_s26 = scalar_lea.vmem %s3122_s16, 32 }
 0x11c   : > { %p2549_p10 = scmp.ne.s32.totalorder %s3122_s16, %s2548_s1  ;;  %p2556_p4 = scmp.lt.s32.totalorder %s3122_s16, %s3122_s16 }
 0x11d   : > { %p2557_p3 = scmp.lt.s32.totalorder %s2555_s26, %s2548_s1 }
 0x11e   : > { %p2551_p2 = pnand %p2549_p10, %p3470_p8 }
 0x11f   : > { %p2558_p11 = por %p2557_p3, %p2556_p4 }
 0x120   : > { %p2552_p7 = pneg %p2551_p2 }
 0x122   : > { %p2559_p12 = pnand %p2558_p11, %p2552_p7 }
 0x124   : > { %2562 = shalt.err (!%p2559_p12)
}
 0x125   : > { %2162 = dma.hbm_to_vmem [thread:$0]  (!%p3471_p6), %s3413_s11, 16, %s3122_s16, [#allocation22]  }
 0x126   : > { %s3173_s7 = scalar_lea.hbm %s3402_s0, %s3000_s12  ;;  %s481_s28 = scalar_lea.vmem [#allocation3], %s3004_s19 }
 0x127   : > { %s489_s15 = sshll.u32 %s481_s28, 4  ;;  %s3472_s5 = sand.u32 1, %s2717_s23   ;;  %s490_s15 = int_to_ptr.vmem [resolvable:$true] %s489_s15 }
 0x128   : > { %s478_s2 = scalar_lea.sflag [#allocation4], %s3472_s5  ;;  %s2563_s25 = scalar_lea.hbm %s3173_s7, 128 }
 0x129   : > { %p2564_p8 = scmp.ne.s32.totalorder %s3173_s7, %s2563_s25  ;;  %p3473_p9 = scmp.ne.s32.totalorder %s3469_s29, 0 }
 0x12a   : > { %s2568_s9 = scalar_lea.hbm %s3402_s0, 256  ;;  %p2569_p6 = scmp.lt.u32.totalorder %s3173_s7, %s3402_s0 }
 0x12b   : > { %p2566_p1 = pnand %p2564_p8, %p3473_p9  ;;  %p2570_p0 = scmp.lt.u32.totalorder %s2568_s9, %s2563_s25 }
 0x12c   : > { %p2572_p10 = scmp.lt.u32.totalorder %s2563_s25, %s3173_s7 }
 0x12d   : > { %p2567_p13 = pneg %p2566_p1  ;;  %p2571_p5 = por %p2570_p0, %p2569_p6 }
 0x12f   : > { %p2573_p2 = por %p2572_p10, %p2571_p5 }
 0x131   : > { %p2574_p7 = pnand %p2573_p2, %p2567_p13 }
 0x133   : > { %2577 = shalt.err (!%p2574_p7)
}
 0x134   : > { %s2578_s26 = scalar_lea.vmem %s490_s15, 128  ;;  %s2743_s17 = smov [#allocation3]  }
 0x135   : > { %p2579_p4 = scmp.ne.s32.totalorder %s490_s15, %s2578_s26  ;;  %s2583_s21 = sshll.u32 %s2743_s17, 4  ;;  %s2584_s21 = int_to_ptr.vmem [resolvable:$false] %s2583_s21 }
 0x136   : > { %s2585_s13 = scalar_lea.vmem %s2584_s21, 256  ;;  %p2586_p12 = scmp.lt.s32.totalorder %s490_s15, %s2584_s21 }
 0x137   : > { %p2581_p3 = pnand %p2579_p4, %p3473_p9  ;;  %p2587_p8 = scmp.lt.s32.totalorder %s2585_s13, %s2578_s26 }
 0x139   : > { %p2582_p11 = pneg %p2581_p3  ;;  %p2588_p1 = por %p2587_p8, %p2586_p12 }
 0x13b   : > { %p2589_p0 = pnand %p2588_p1, %p2582_p11 }
 0x13d   : > { %2592 = shalt.err (!%p2589_p0)
}
 0x13e   : > { %p3474_p6 = scmp.ne.s32.totalorder %s3467_s24, 0  ;;  %s3475_s5 = sld [smem:[#allocation42_spill]] }
 0x13f   : > { %s518_s16 = scalar_lea.vmem [#allocation8], %s3004_s19 }
 0x140   : > { %2166 = dma.hbm_to_vmem [thread:$0]  (!%p3474_p6), %s3173_s7, 128, %s490_s15, %s478_s2  }
 0x141   : > { %s525_s3 = sshll.u32 %s518_s16, 4  ;;  %s526_s3 = int_to_ptr.vmem [resolvable:$true] %s525_s3 }
 0x144   : > { %s3199_s25 = scalar_lea.hbm %s3475_s5, %s3000_s12  ;;  %s2598_s7 = scalar_lea.hbm %s3475_s5, 256 }
 0x145   : > { %s2593_s9 = scalar_lea.hbm %s3199_s25, 128  ;;  %p2599_p2 = scmp.lt.u32.totalorder %s3199_s25, %s3475_s5 }
 0x146   : > { %p2594_p13 = scmp.ne.s32.totalorder %s3199_s25, %s2593_s9  ;;  %p2600_p7 = scmp.lt.u32.totalorder %s2598_s7, %s2593_s9 }
 0x147   : > { %p2602_p3 = scmp.lt.u32.totalorder %s2593_s9, %s3199_s25 }
 0x148   : > { %p2596_p5 = pnand %p2594_p13, %p3473_p9  ;;  %p2601_p4 = por %p2600_p7, %p2599_p2 }
 0x14a   : > { %p2597_p10 = pneg %p2596_p5  ;;  %p2603_p11 = por %p2602_p3, %p2601_p4 }
 0x14c   : > { %p2604_p12 = pnand %p2603_p11, %p2597_p10 }
 0x14e   : > { %2607 = shalt.err (!%p2604_p12)
}
 0x14f   : > { %s2608_s12 = scalar_lea.vmem %s526_s3, 128  ;;  %s2744_s19 = smov [#allocation8]  }
 0x150   : > { %p2609_p8 = scmp.ne.s32.totalorder %s526_s3, %s2608_s12  ;;  %s2613_s26 = sshll.u32 %s2744_s19, 4  ;;  %s2614_s26 = int_to_ptr.vmem [resolvable:$false] %s2613_s26 }
 0x151   : > { %s2615_s17 = scalar_lea.vmem %s2614_s26, 256  ;;  %p2616_p13 = scmp.lt.s32.totalorder %s526_s3, %s2614_s26 }
 0x152   : > { %p2611_p1 = pnand %p2609_p8, %p3473_p9  ;;  %p2617_p5 = scmp.lt.s32.totalorder %s2615_s17, %s2608_s12 }
 0x154   : > { %p2612_p0 = pneg %p2611_p1  ;;  %p2618_p6 = por %p2617_p5, %p2616_p13 }
 0x156   : > { %p2619_p2 = pnand %p2618_p6, %p2612_p0 }
 0x158   : > { %2622 = shalt.err (!%p2619_p2)
}
 0x159   : > { %p3476_p7 = scmp.ne.s32.totalorder %s3467_s24, 0  ;;  %s3477_s21 = sld [smem:[#allocation36_spill]] }
 0x15b   : > { %2172 = dma.hbm_to_vmem [thread:$0]  (!%p3476_p7), %s3199_s25, 128, %s526_s3, %s3022_s18  }
 0x15f   : > { %p3478_p10 = scmp.ne.s32.totalorder %s3477_s21, 0 }
 0x160   : > { %s3223_s29 = sand.u32 (!%p3478_p10), 1, %s2713_s22   ;;  %p3479_p9 = scmp.ne.s32.totalorder (!%p3478_p10), %s3461_s30, 0 }
 0x161   : > { %534 = sbr.rel (%p3478_p10) target bundleno = 2297 (0x8f9), region = 68  ;;  %s3226_s13 = sshll.u32 (!%p3478_p10), %s3223_s29, 3 }
 0x162   : > { %s537_s14 = scalar_lea.sflag (!%p3478_p10), [#allocation4], %s3223_s29  ;;  %s540_s28 = scalar_lea.vmem (!%p3478_p10), [#allocation3], %s3226_s13 }
 0x168   : > { %2676 = dma.done.wait (%p3479_p9), %s537_s14, 128  }
 0x169   : > { %2678 = vsyncadd (%p3479_p9), %s537_s14, 4294967168  ;;  %s545_s24 = sand.u32 1, %s2851_s27   ;;  %s549_s25 = scalar_lea.vmem [#allocation6], %s3226_s13 }
 0x16a   : > { %s546_s18 = scalar_lea.sflag [#allocation7], %s545_s24 }
 0x16b   : > { %2680 = dma.done.wait (%p3479_p9), %s546_s18, 256  }
 0x16c   : > { %2682 = vsyncadd (%p3479_p9), %s546_s18, 4294967040  ;;  %s558_s16 = scalar_lea.vmem [#allocation8], %s3226_s13  ;;  %p3480_p6 = scmp.eq.s32.totalorder %s2851_s27, 0 }
 0x16e   : > { %2684 = dma.done.wait (%p3480_p6), [#allocation10], 640   ;;  %p3481_p4 = pmov %p3480_p6 }
 0x170   : > { %2686 = vsyncadd (%p3481_p4), [#allocation10], 4294966656  ;;  %p3482_p3 = pmov %p3481_p4 }
 0x172   : > { %2688 = dma.done.wait (%p3482_p3), [#allocation13], 528   ;;  %p3483_p11 = pmov %p3482_p3 }
 0x173   : > { %p3484_p12 = pmov %p3482_p3 }
 0x174   : > { %2690 = vsyncadd (%p3483_p11), [#allocation13], 4294966768 }
 0x175   : > { %2692 = dma.done.wait (%p3484_p12), [#allocation16], 528   ;;  %p3485_p8 = pmov %p3482_p3 }
 0x176   : > { %p3486_p1 = pmov %p3482_p3 }
 0x177   : > { %2694 = vsyncadd (%p3485_p8), [#allocation16], 4294966768 }
 0x178   : > { %2696 = dma.done.wait (%p3486_p1), [#allocation19], 528   ;;  %p3487_p0 = pmov %p3486_p1 }
 0x17a   : > { %2698 = vsyncadd (%p3487_p0), [#allocation19], 4294966768  ;;  %p3488_p13 = pmov %p3487_p0 }
 0x17b   : > { %p3489_p5 = pmov %p3487_p0 }
 0x17c   : > { %2700 = dma.done.wait (%p3488_p13), [#allocation22], 16  }
 0x17d   : > { %2702 = vsyncadd (%p3489_p5), [#allocation22], 4294967280  ;;  %v2745_v0 = vmov 0.0|0.0   ;;  %vm2746_vm0 = vmmov 0   ;;  %v2747_v1 = vmov 0.0   ;;  %v733_v2 = vld [vmem:[#allocation14] sm:$0xff] }
 0x17e   : > { %2073 = vmatprep.subr.bf16.mxu1 %v2745_v0  ;;  %2067 = vmatprep.subr.bf16.mxu0 %v2745_v0  ;;  %v734_v3 = vld [vmem:[#allocation14 + $0x8] sm:$0xff]  ;;  %v648_v4 = vld [vmem:[#allocation11] sm:$0xff]  ;;  %v735_v7 = vld [vmem:[#allocation14 + $0x10] sm:$0xff]  ;;  %vm659_vm1 = vcmask 261120   ;;  %vm902_vm2 = vcmask 64512   ;;  %s2748_s27 = smov 120  }
 0x17f   : > { %2002 = vmatprep.mubr.msk.f32.mxu1 %vm2746_vm0, %v2747_v1  ;;  %1991 = vmatprep.mubr.msk.f32.mxu0 %vm2746_vm0, %v2747_v1  ;;  %v2074_v5 = vpack.c.bf16 %v734_v3, %v733_v2  ;;  %v649_v6 = vld [vmem:[#allocation11 + $0x8] sm:$0xff]  ;;  %v736_v8 = vld [vmem:[#allocation14 + $0x18] sm:$0xff]  ;;  %v650_v10 = vld [vmem:[#allocation11 + $0x10] sm:$0xff]  ;;  %s2749_s30 = smov 112   ;;  %s2750_s3 = smov 104   ;;  %vm1234_vm3 = vcmask 130112  }
 0x180   : > { %v2068_v9 = vpack.c.bf16 %v649_v6, %v648_v4  ;;  %v651_v11 = vld [vmem:[#allocation11 + $0x18] sm:$0xff]  ;;  %v2077_v12 = vpack.c.bf16 %v736_v8, %v735_v7  ;;  %v645_v15 = vld [vmem:[%s540_s28] sm:$0xff]  ;;  %v1925_v16 = vld [vmem:[#allocation15] ss:$0 sm:$0xff]  ;;  %s2751_s9 = smov 8   ;;  %s2752_s20 = smov 16  }
 0x181   : > { %2075 = vmatpush3.bf16.msra.mxu1 %v2074_v5  ;;  %v2071_v13 = vpack.c.bf16 %v651_v11, %v650_v10  ;;  %v646_v14 = vld [vmem:[%s549_s25] sm:$0xff]  ;;  %v818_v25 = vld [vmem:[#allocation17 + $0x8] sm:$0xff]  ;;  %s3490_s1 = sld [smem:[#allocation33_spill]]  ;;  %s2753_s7 = smov 24   ;;  %vm1405_vm4 = vcmask 195712   ;;  %vm1576_vm5 = vcmask 261312  }
 0x182   : > { %2069 = vmatpush3.bf16.msra.mxu0 %v2068_v9  ;;  %2076 = vmatprep.subr.bf16.mxu1 %v2745_v0  ;;  %v1923_v17 = vld [vmem:[#allocation12] ss:$0 sm:$0xff]  ;;  %v817_v24 = vld [vmem:[#allocation17] sm:$0xff]  ;;  %v819_v26 = vld [vmem:[#allocation17 + $0x10] sm:$0xff]  ;;  %s3491_s15 = sld [smem:[#allocation38_spill]]  ;;  %s644_s12 = scalar_lea.vmem [#allocation23], %s3226_s13 }
 0x183   : > { %2070 = vmatprep.subr.bf16.mxu0 %v2745_v0  ;;  %v2080_v27 = vpack.c.bf16 %v818_v25, %v817_v24  ;;  %v820_v28 = vld [vmem:[#allocation17 + $0x18] sm:$0xff]  ;;  %v647_v30 = vld [vmem:[%s558_s16] sm:$0xff]  ;;  %v1927_v41 = vld [vmem:[#allocation18] ss:$0 sm:$0xff]  ;;  %s1679_s19 = sshll.u32 %s644_s12, 4  ;;  %s3492_s21 = sld [smem:[#allocation47_spill]]  ;;  %s3354_s19 = int_to_ptr.vmem [resolvable:$true] %s1679_s19 }
 0x184   : > { %v2083_v29 = vpack.c.bf16 %v820_v28, %v819_v26  ;;  %v901_v31 = vld [vmem:[#allocation9] sm:$0xff]  ;;  %s1665_s24 = scalar_lea.sflag [#allocation5], %s3223_s29  ;;  %s2623_s18 = scalar_lea.vmem %s3354_s19, 128 }
 0x185   : > { %2078 = vmatpush3.bf16.msra.mxu1 %v2077_v12  ;;  %p2624_p2 = scmp.ne.s32.totalorder %s3354_s19, %s2623_s18  ;;  %s2754_s13 = smov [#allocation23]  }
 0x186   : > { %2072 = vmatpush3.bf16.msra.mxu0 %v2071_v13  ;;  %2016 = vmatprep.subr.mxu1 %v2747_v1  ;;  %s2627_s25 = sshll.u32 %s2754_s13, 4  ;;  %s2628_s25 = int_to_ptr.vmem [resolvable:$false] %s2627_s25 }
 0x187   : > { %2079 = vmatprep.subr.bf16.mxu0 %v2745_v0  ;;  %s1944_s2 = sshll.u32 %s3490_s1, 7  ;;  %s2629_s16 = scalar_lea.vmem %s2628_s25, 256 }
 0x188   : > { %2003 = vmatmul.mubr.msk.f32.vlgmr.msra.gmra.mrb[0].mxu1 %vm659_vm1, %v646_v14  ;;  %p3494_p7 = scmp.ne.s32.totalorder %s3491_s15, 0  ;;  %p2630_p6 = scmp.lt.s32.totalorder %s3354_s19, %s2628_s25 }
 0x189   : > { %1992 = vmatmul.mubr.msk.f32.vlgmr.msra.gmra.mrb[0].mxu0 %vm659_vm1, %v645_v15  ;;  %2018 = vmatprep.mubr.msk.f32.mxu1 %vm2746_vm0, %v2747_v1  ;;  %s3493_s14 = smov %s3492_s21  ;;  %s3352_s28 = scalar_lea.hbm %s3492_s21, %s1944_s2 }
 0x18a   : > { %2013 = vmatprep.mubr.msk.f32.mxu0 %vm2746_vm0, %v2747_v1  ;;  %2081 = vmatpush3.bf16.msra.mxu0 %v2080_v27  ;;  %p2625_p10 = pnand %p2624_p2, %p3494_p7  ;;  %p2631_p4 = scmp.lt.s32.totalorder %s2629_s16, %s2623_s18 }
 0x18b   : > { %2082 = vmatprep.subr.bf16.mxu0 %v2745_v0 }
 0x18c   : > { %p2626_p9 = pneg %p2625_p10  ;;  %p2632_p3 = por %p2631_p4, %p2630_p6 }
 0x18e   : > { %2084 = vmatpush3.bf16.msra.mxu0 %v2083_v29  ;;  %p2633_p11 = pnand %p2632_p3, %p2626_p9 }
 0x18f   : > { %2036 = vmatprep.subr.mxu0 %v2747_v1 }
 0x191   : > { %2014 = vmatmul.mubr.msk.f32.vlgmr.msra.gmra.mrb[2].mxu0 %vm659_vm1, %v647_v30 }
 0x192   : > { %2038 = vmatprep.mubr.msk.f32.mxu0 %vm2746_vm0, %v2747_v1 }
 0x25b   : > { %v813_v18 = vpop.f32.mrb[0].mxu1 }
 0x25c   : > { %v814_v19 = vadd.f32 %v1925_v16, %v813_v18  ;;  %v2004_v20 = vpop.f32.mrb[1].mxu1  ;;  %v729_v21 = vpop.f32.mrb[0].mxu0 }
 0x25d   : > { %v730_v22 = vadd.f32 %v1923_v17, %v729_v21  ;;  %v1993_v23 = vpop.f32.mrb[1].mxu0 }
 0x25e   : > { %1066 = vrot.lane.b32.xlu1 %v814_v19, %s2748_s27  ;;  %2017 = vmatpush3.xpose.msk.msra.mxu1 %vm902_vm2, %v814_v19 }
 0x25f   : > { %2021 = vmatprep.subr.mxu1 %v2747_v1 }
 0x261   : > { %2019 = vmatmul.mubr.msk.f32.vlgmr.msra.gmra.mrb[2].mxu1 %vm902_vm2, %v730_v22 }
 0x262   : > { %1064 = vrot.lane.b32.xlu1 %v730_v22, %s2748_s27  ;;  %2023 = vmatprep.mubr.msk.f32.mxu1 %vm2746_vm0, %v2747_v1 }
 0x264   : > { %v897_v42 = vpop.f32.mrb[2].mxu0 }
 0x265   : > { %v3300_v43 = vadd.f32 %v1927_v41, %v897_v42  ;;  %v2015_v44 = vpop.f32.mrb[3].mxu0 }
 0x266   : > { %1236 = vrot.lane.b32.xlu1 %v730_v22, %s2749_s30 }
 0x267   : > { %2022 = vmatpush3.msra.mxu1 %v3300_v43 }
 0x268   : > { %2026 = vmatprep.subr.mxu1 %v2747_v1 }
 0x26a   : > { %1409 = vrot.lane.b32.xlu1 %v814_v19, %s2750_s3 }
 0x26e   : > { %1407 = vrot.lane.b32.xlu1 %v730_v22, %s2750_s3 }
 0x2d0   : > { %v1067_v45 = vpop.permute.xlu1 %1066 }
 0x2d4   : > { %v1065_v46 = vpop.permute.xlu1 %1064 }
 0x2d8   : > { %v1237_v47 = vpop.permute.xlu1 %1236 }
 0x2dc   : > { %v1410_v50 = vpop.permute.xlu1 %1409 }
 0x2e0   : > { %v1408_v52 = vpop.permute.xlu1 %1407 }
 0x334   : > { %v975_v32 = vpop.f32.mrb[2].mxu1 }
 0x335   : > { %v976_v33 = vadd.f32 %v975_v32, %v901_v31  ;;  %v2020_v34 = vpop.f32.mrb[3].mxu1 }
 0x336   : > { %v1580_v34 = vld [vmem:[#allocation20 + $0x8] sm:$0xff] }
 0x337   : > { %v979_v35 = vsel %vm902_vm2, %v976_v33, -inf }
 0x338   : > { %980 = vmax.xlane.f32.xlu0 %v979_v35 }
 0x3c5   : > { %v981_v36 = vpop.xlane.xlu0 %980 }
 0x3c6   : > { %v982_v37 = vsub.f32 %v976_v33, %v981_v36  ;;  %v1579_v33 = vld [vmem:[#allocation20] sm:$0xff]  ;;  %v1581_v36 = vld [vmem:[#allocation20 + $0x10] sm:$0xff] }
 0x3c7   : > { %v2086_v35 = vpack.c.bf16 %v1580_v34, %v1579_v33 }
 0x3c8   : > { %v983_v38 = vmul.f32 1.442695, %v982_v37  ;;  %v1582_v37 = vld [vmem:[#allocation20 + $0x18] sm:$0xff] }
 0x3ca   : > { %2265 = vpow2.f32 %v983_v38  ;;  %v2089_v38 = vpack.c.bf16 %v1582_v37, %v1581_v36 }
 0x3d4   : > { %v2266_v39 = vpop.eup %2265 }
 0x3d5   : > { %v985_v40 = vsel %vm902_vm2, %v2266_v39, 0.0 }
 0x3d6   : > { %986 = vadd.xlane.f32.xlu0 %v985_v40 }
 0x3ec   : > { %1238 = vrot.lane.b32.xlu0 %v814_v19, %s2749_s30 }
 0x463   : > { %v987_v48 = vpop.xlane.xlu0 %986 }
 0x464   : > { %2267 = vrcp.f32 %v987_v48 }
 0x467   : > { %v1239_v49 = vpop.permute.xlu0 %1238 }
 0x468   : > { %2037 = vmatpush3.xpose.msk.msra.mxu0 %vm902_vm2, %v1239_v49 }
 0x469   : > { %2046 = vmatprep.subr.mxu0 %v2747_v1 }
 0x46b   : > { %2039 = vmatmul.mubr.msk.f32.vlgmr.msra.gmra.mrb[4].mxu0 %vm902_vm2, %v1237_v47  ;;  %v1941_v47 = vld [vmem:[#allocation21] ss:$0 sm:$0xff] }
 0x46c   : > { %2047 = vmatpush3.xpose.msk.msra.mxu0 %vm902_vm2, %v1410_v50  ;;  %2048 = vmatprep.mubr.msk.f32.mxu0 %vm2746_vm0, %v2747_v1 }
 0x46d   : > { %2085 = vmatprep.subr.bf16.mxu0 %v2745_v0 }
 0x46e   : > { %v2268_v51 = vpop.eup %2267 }
 0x46f   : > { %v989_v53 = vmul.f32 %v2268_v51, %v2266_v39  ;;  %2049 = vmatmul.mubr.msk.f32.vlgmr.msra.gmra.mrb[6].mxu0 %vm902_vm2, %v1408_v52 }
 0x470   : > { %2064 = vmatprep.mubr.msk.f32.mxu0 %vm2746_vm0, %v2747_v1  ;;  %2087 = vmatpush3.bf16.msra.mxu0 %v2086_v35 }
 0x471   : > { %2024 = vmatmul.mubr.msk.f32.vlgmr.msra.gmra.mrb[4].mxu1 %vm902_vm2, %v989_v53  ;;  %2088 = vmatprep.subr.bf16.mxu0 %v2745_v0 }
 0x472   : > { %2027 = vmatpush3.xpose.msk.msra.mxu1 %vm902_vm2, %v1067_v45  ;;  %2028 = vmatprep.mubr.msk.f32.mxu1 %vm2746_vm0, %v2747_v1 }
 0x473   : > { %2031 = vmatprep.subr.mxu1 %v2747_v1 }
 0x474   : > { %2090 = vmatpush3.bf16.msra.mxu0 %v2089_v38 }
 0x475   : > { %2029 = vmatmul.mubr.msk.f32.vlgmr.msra.gmra.mrb[6].mxu1 %vm902_vm2, %v1065_v46 }
 0x476   : > { %2033 = vmatprep.mubr.msk.f32.mxu1 %vm2746_vm0, %v2747_v1 }
 0x53e   : > { %v1310_v54 = vpop.f32.mrb[4].mxu0 }
 0x53f   : > { %v1311_v55 = vadd.f32 %v1310_v54, %v901_v31  ;;  %v2040_v56 = vpop.f32.mrb[5].mxu0 }
 0x541   : > { %v1314_v57 = vsel %vm902_vm2, %v1311_v55, -inf }
 0x542   : > { %1315 = vmax.xlane.f32.xlu0 %v1314_v57  ;;  %v1481_v58 = vpop.f32.mrb[6].mxu0 }
 0x543   : > { %v2050_v59 = vpop.f32.mrb[7].mxu0  ;;  %v1482_v3 = vadd.f32 %v1481_v58, %v901_v31 }
 0x544   : > { %v1059_v60 = vpop.f32.mrb[4].mxu1 }
 0x545   : > { %1063 = vst.msk [vmem:[#allocation2] sm:$0xff] %vm902_vm2, %v1059_v60  ;;  %v2025_v61 = vpop.f32.mrb[5].mxu1  ;;  %v1485_v5 = vsel %vm902_vm2, %v1482_v3, -inf }
 0x548   : > { %v1138_v62 = vpop.f32.mrb[6].mxu1 }
 0x549   : > { %v1139_v63 = vadd.f32 %v1138_v62, %v901_v31  ;;  %v2030_v2 = vpop.f32.mrb[7].mxu1 }
 0x54b   : > { %v1142_v4 = vsel %vm902_vm2, %v1139_v63, -inf }
 0x54c   : > { %1143 = vmax.xlane.f32.xlu1 %v1142_v4 }
 0x550   : > { %1486 = vmax.xlane.f32.xlu1 %v1485_v5 }
 0x5cf   : > { %v1316_v6 = vpop.xlane.xlu0 %1315 }
 0x5d0   : > { %v1317_v7 = vsub.f32 %v1311_v55, %v1316_v6 }
 0x5d2   : > { %v1318_v8 = vmul.f32 1.442695, %v1317_v7 }
 0x5d4   : > { %2269 = vpow2.f32 %v1318_v8 }
 0x5d9   : > { %v1144_v9 = vpop.xlane.xlu1 %1143 }
 0x5da   : > { %v1145_v17 = vsub.f32 %v1139_v63, %v1144_v9 }
 0x5dc   : > { %v1146_v18 = vmul.f32 1.442695, %v1145_v17 }
 0x5dd   : > { %v1487_v10 = vpop.xlane.xlu1 %1486 }
 0x5de   : > { %v2270_v11 = vpop.eup %2269  ;;  %v1488_v12 = vsub.f32 %v1482_v3, %v1487_v10 }
 0x5df   : > { %v1320_v13 = vsel %vm902_vm2, %v2270_v11, 0.0 }
 0x5e0   : > { %v1489_v14 = vmul.f32 1.442695, %v1488_v12  ;;  %1321 = vadd.xlane.f32.xlu0 %v1320_v13 }
 0x5e2   : > { %2271 = vpow2.f32 %v1489_v14 }
 0x5e3   : > { %2273 = vpow2.f32 %v1146_v18 }
 0x5ec   : > { %v2272_v15 = vpop.eup %2271 }
 0x5ed   : > { %v1491_v16 = vsel %vm902_vm2, %v2272_v15, 0.0  ;;  %v2274_v19 = vpop.eup %2273 }
 0x5ee   : > { %1492 = vadd.xlane.f32.xlu1 %v1491_v16  ;;  %v1148_v20 = vsel %vm902_vm2, %v2274_v19, 0.0 }
 0x5f6   : > { %1154 = vrot.lane.b32.xlu0 %v3300_v43, %s2748_s27 }
 0x5ff   : > { %1325 = vrot.lane.b32.xlu1 %v3300_v43, %s2749_s30 }
 0x623   : > { %1149 = vadd.xlane.f32.xlu1 %v1148_v20 }
 0x634   : > { %1496 = vrot.lane.b32.xlu1 %v3300_v43, %s2750_s3 }
 0x66d   : > { %v1322_v21 = vpop.xlane.xlu0 %1321 }
 0x671   : > { %v1155_v22 = vpop.permute.xlu0 %1154 }
 0x672   : > { %2032 = vmatpush3.msra.mxu1 %v1155_v22 }
 0x673   : > { %2041 = vmatprep.subr.mxu1 %v2747_v1 }
 0x67b   : > { %v1493_v23 = vpop.xlane.xlu1 %1492 }
 0x67f   : > { %v1326_v24 = vpop.permute.xlu1 %1325 }
 0x6b0   : > { %v1150_v25 = vpop.xlane.xlu1 %1149 }
 0x6b1   : > { %2275 = vrcp.f32 %v1150_v25 }
 0x6b2   : > { %2277 = vrcp.f32 %v1322_v21 }
 0x6b3   : > { %2279 = vrcp.f32 %v1493_v23 }
 0x6b4   : > { %v1497_v31 = vpop.permute.xlu1 %1496 }
 0x6bb   : > { %v2276_v26 = vpop.eup %2275 }
 0x6bc   : > { %v1152_v27 = vmul.f32 %v2276_v26, %v2274_v19  ;;  %v2278_v28 = vpop.eup %2277 }
 0x6bd   : > { %v1324_v29 = vmul.f32 %v2278_v28, %v2270_v11  ;;  %v2280_v30 = vpop.eup %2279 }
 0x6be   : > { %2034 = vmatmul.mubr.msk.f32.vlgmr.msra.gmra.mrb[8].mxu1 %vm902_vm2, %v1152_v27  ;;  %v1495_v32 = vmul.f32 %v2280_v30, %v2272_v15 }
 0x6bf   : > { %2042 = vmatpush3.msra.mxu1 %v1326_v24  ;;  %2043 = vmatprep.mubr.msk.f32.mxu1 %vm2746_vm0, %v2747_v1 }
 0x6c0   : > { %2051 = vmatprep.subr.mxu1 %v2747_v1 }
 0x6c2   : > { %2044 = vmatmul.mubr.msk.f32.vlgmr.msra.gmra.mrb[10].mxu1 %vm902_vm2, %v1324_v29 }
 0x6c3   : > { %2052 = vmatpush3.msra.mxu1 %v1497_v31  ;;  %2053 = vmatprep.mubr.msk.f32.mxu1 %vm2746_vm0, %v2747_v1 }
 0x6c6   : > { %2054 = vmatmul.mubr.msk.f32.vlgmr.msra.gmra.mrb[12].mxu1 %vm902_vm2, %v1495_v32 }
 0x791   : > { %v1226_v39 = vpop.f32.mrb[8].mxu1 }
 0x792   : > { %1231 = vrot.lane.b32.xlu0 %v1226_v39, %s2751_s9  ;;  %v2035_v40 = vpop.f32.mrb[9].mxu1 }
 0x795   : > { %v1397_v41 = vpop.f32.mrb[10].mxu1 }
 0x796   : > { %1402 = vrot.lane.b32.xlu1 %v1397_v41, %s2752_s20  ;;  %v2045_v1 = vpop.f32.mrb[11].mxu1 }
 0x799   : > { %v1568_v42 = vpop.f32.mrb[12].mxu1 }
 0x79a   : > { %1573 = vrot.lane.b32.xlu0 %v1568_v42, %s2753_s7  ;;  %v2055_v43 = vpop.f32.mrb[13].mxu1 }
 0x804   : > { %v1232_v44 = vpop.permute.xlu0 %1231 }
 0x805   : > { %1235 = vst.msk [vmem:[#allocation2] sm:$0xff] %vm1234_vm3, %v1232_v44 }
 0x808   : > { %v1403_v0 = vpop.permute.xlu1 %1402 }
 0x809   : > { %1406 = vst.msk [vmem:[#allocation2] sm:$0xff] %vm1405_vm4, %v1403_v0 }
 0x80c   : > { %v1574_v45 = vpop.permute.xlu0 %1573 }
 0x80d   : > { %1577 = vst.msk [vmem:[#allocation2] sm:$0xff] %vm1576_vm5, %v1574_v45 }
 0x814   : > { %v1578_v46 = vld [vmem:[#allocation2] sm:$0xff] }
 0x815   : > { %2065 = vmatmul.mubr.msk.f32.vlgmr.msra.gmra.mrb[8].mxu0 %vm659_vm1, %v1578_v46 }
 0x8e8   : > { %v1659_v48 = vpop.f32.mrb[8].mxu0 }
 0x8e9   : > { %v1660_v49 = vadd.f32 %v1941_v47, %v1659_v48  ;;  %v2066_v50 = vpop.f32.mrb[9].mxu0 }
 0x8eb   : > { %1663 = vst.msk [vmem:[%s644_s12] sm:$0xff] %vm659_vm1, %v1660_v49 }
 0x8ec   : > { %2636 = shalt.err (!%p2633_p11)
}
 0x8ed   : > { %s2637_s29 = scalar_lea.hbm %s3352_s28, 128  ;;  %s2641_s3 = scalar_lea.hbm %s3493_s14, 256 }
 0x8ee   : > { %p2638_p12 = scmp.ne.s32.totalorder %s3352_s28, %s2637_s29  ;;  %p2642_p0 = scmp.lt.u32.totalorder %s3352_s28, %s3493_s14 }
 0x8ef   : > { %p2643_p13 = scmp.lt.u32.totalorder %s2641_s3, %s2637_s29  ;;  %p2645_p2 = scmp.lt.u32.totalorder %s2637_s29, %s3352_s28 }
 0x8f0   : > { %p2639_p8 = pnand %p2638_p12, %p3494_p7 }
 0x8f1   : > { %p2644_p5 = por %p2643_p13, %p2642_p0 }
 0x8f2   : > { %p2640_p1 = pneg %p2639_p8 }
 0x8f3   : > { %p2646_p10 = por %p2645_p2, %p2644_p5 }
 0x8f5   : > { %p2647_p9 = pnand %p2646_p10, %p2640_p1 }
 0x8f7   : > { %2650 = shalt.err (!%p2647_p9)
}
 0x8f8   : > { %2133 = dma.vmem_to_hbm [thread:$0]  (%p3494_p7), %s3354_s19, 128, %s3352_s28, %s1665_s24  }
 0x8f9 PF: > { %s3495_s1 = sld [smem:[#allocation32_spill]]  ;;  %s3496_s7 = sld [smem:[#allocation40_spill]] }
 0x8fa   : > { %s3497_s2 = sld [smem:[#allocation35_spill]] }
 0x8ff   : > { %s1691_s12 = sand.u32 1, %s3495_s1   ;;  %p3498_p6 = scmp.ne.s32.totalorder %s3496_s7, 0 }
 0x900   : > { %p3499_p4 = scmp.ge.s32.totalorder %s3497_s2, 2  ;;  %s1692_s26 = scalar_lea.sflag [#allocation5], %s1691_s12 }
 0x902   : > { %p2174_p3 = pnand %p3499_p4, %p3498_p6 }
 0x904   : > { %2704 = dma.done.wait (!%p2174_p3), %s1692_s26, 128  }
 0x905   : > { %2706 = vsyncadd (!%p2174_p3), %s1692_s26, 4294967168  ;;  %s36_s26 = sadd.s32 1, %s3497_s2   ;;  %s3500_s15 = sld [smem:[#allocation39_spill]] }
 0x906   : > { %p33_p11 = scmp.ge.s32.totalorder %s36_s26, 4   ;;  %s3501_s24 = sld [smem:[#allocation34_spill]] }
 0x907   : > { %s3502_s25 = sld [smem:[#allocation37_spill]]  ;;  %s3503_s21 = smov %s2713_s22 }
 0x908   : > { %s3504_s22 = smov %s2717_s23  ;;  %35 = sbr.rel (!%p33_p11) target bundleno = 21 (0x15), region = 174 }
 0x90b   : > { %s3505_s23 = smov %s3500_s15 }
 0x90f   :  { %1697 = vsyncpa [#allocation4], 1 }
 0x910   :  { %1699 = vsyncpa [#allocation4 + $0x1], 1 }
 0x911   :  { %1700 = vsyncpa [#allocation7], 1 }
 0x912   :  { %1702 = vsyncpa [#allocation7 + $0x1], 1 }
 0x913   :  { %1703 = vsyncpa [#allocation10], 1 }
 0x914   :  { %1704 = vsyncpa [#allocation13], 1 }
 0x915   :  { %1705 = vsyncpa [#allocation16], 1 }
 0x916   :  { %1706 = vsyncpa [#allocation19], 1 }
 0x917   :  { %1707 = vsyncpa [#allocation22], 1 }
 0x918   :  { %1708 = vsyncpa [#allocation5], 1 }
 0x919   :  { %1710 = vsyncpa [#allocation5 + $0x1], 1 }

</bundles_post_ra>
